<compile_context>
chip_gen: v7x
topology: tpu7x:2x2x1
jax: 0.10.0
libtpu: 0.0.40
codegen_flags: <defaults>
</compile_context>

<pallas_src>
import functools

import jax
import jax.numpy as jnp
from jax import lax
from jax.experimental import pallas as pl
from jax.experimental.pallas import tpu as pltpu

# ----------------------------- config -----------------------------------
LATENT_DIM     = 32
OUTPUT_DIM     = 16
NUM_NODE_FEATS = 8
NUM_EDGE_FEATS = 4
MAX_LV         = 3

# lane-dense padded widths (a vreg is 128 lanes wide)
L_PAD = 128     # padded latent width
O_PAD = 128     # padded output width

N_NODES  = 16   # total nodes across graphs
N_EDGES  = 32   # total directed edge-messages
N_GRAPHS = 2    # batch of graphs

# switch to the streaming/tiled kernel only once the bf16 e2e operator no
# longer comfortably fits VMEM alongside the carry
_TILED_E2E_BYTES_THRESHOLD = 4 * 1024 * 1024


# ----------------------- small-graph kernel (1 step) ---------------------
def _loopy_bp_small_kernel(max_lv,
                           node_ref, edge_ref, n2e_ref, e2e_ref, e2n_ref,
                           subg_ref,
                           wn_ref, bn_ref, we_ref, be_ref,
                           wc_ref, bc_ref, wo_ref, bo_ref,
                           out_ref):
    """Whole problem VMEM-resident; one grid step; BP loop unrolled in-kernel."""
    f32 = jnp.float32

    node_lin = (jnp.dot(node_ref[...], wn_ref[...],
                        preferred_element_type=f32) + bn_ref[...])
    edge_lin = (jnp.dot(edge_ref[...], we_ref[...],
                        preferred_element_type=f32) + be_ref[...])
    msg = edge_lin + jnp.dot(n2e_ref[...], node_lin, preferred_element_type=f32)

    # fold bias + residual once: base = input_message + bc
    base = msg + bc_ref[...]
    cur0 = jnp.maximum(msg, 0.0)

    def bp_step(_, cur):
        e2epool = jnp.dot(e2e_ref[...], cur, preferred_element_type=f32)
        return jnp.maximum(
            jnp.dot(e2epool, wc_ref[...], preferred_element_type=f32) + base,
            0.0)

    cur = lax.fori_loop(0, max_lv, bp_step, cur0, unroll=True)

    hidden = jnp.maximum(
        jnp.dot(e2n_ref[...], cur, preferred_element_type=f32), 0.0)
    out_lin = jnp.maximum(
        jnp.dot(hidden, wo_ref[...], preferred_element_type=f32) + bo_ref[...],
        0.0)
    out_ref[...] = jnp.maximum(
        jnp.dot(subg_ref[...], out_lin, preferred_element_type=f32), 0.0)


# ----------------------- tiled / streaming kernel -------------------------
def _make_loopy_bp_tiled_kernel(*, tile_e, max_lv, n_tiles):
    """Phase-gridded loopy-BP kernel for large graphs.

    grid = (max_lv + 1, n_tiles)
      phase 0          : input linears + input_message / base / cur0 per tile
      phase 1..max_lv  : BP update per row-tile, streaming (tile_e, E) e2e
      readout          : fused into (phase == max_lv, tile == n_tiles - 1)
    """
    bf16 = jnp.bfloat16

    def kernel(edge_ref, n2e_ref, e2e_ref,                 # row-tiled inputs
               node_ref, e2n_ref, subg_ref,                # whole-array inputs
               wn_ref, bn_ref, we_ref, be_ref,
               wc_ref, bc_ref, wo_ref, bo_ref,
               out_ref,                                    # (G, O_PAD) output
               node_lin_ref, base_ref, cur_ref):           # VMEM scratch
        f32 = jnp.float32
        phase = pl.program_id(0)
        tile = pl.program_id(1)
        row0 = pl.multiple_of(tile * tile_e, tile_e)

        # ------------- phase 0: input linears + message init -------------
        @pl.when(phase == 0)
        def _init():
            # node linear computed once (first tile), reused by all tiles.
            @pl.when(tile == 0)
            def _node_lin():
                node_lin_ref[...] = (
                    jnp.dot(node_ref[...], wn_ref[...],
                            preferred_element_type=f32) + bn_ref[...])

            edge_lin = (jnp.dot(edge_ref[...], we_ref[...],
                                preferred_element_type=f32) + be_ref[...])
            # n2e shipped as bf16 (0/1 exact); one-time f32 upcast dot.
            msg = edge_lin + jnp.dot(n2e_ref[...].astype(f32),
                                     node_lin_ref[...],
                                     preferred_element_type=f32)
            # fold bias + residual once: base = input_message + bc
            base_ref[pl.ds(row0, tile_e), :] = msg + bc_ref[...]
            # cur_0 = relu(input_message); carry stored bf16 (halves footprint)
            cur_ref[0, pl.ds(row0, tile_e), :] = jnp.maximum(msg, 0.0).astype(bf16)

        # ------------- phases 1..max_lv: BP message update ----------------
        @pl.when(phase >= 1)
        def _bp_step():
            prev_slot = (phase + 1) % 2          # slot written by phase - 1
            cur_slot = phase % 2
            cur_prev = cur_ref[prev_slot]        # (E, L_PAD) bf16, no per-step cast
            # dominant dot: bf16 x bf16 on the MXU, f32 accumulate
            e2epool = jnp.dot(e2e_ref[...], cur_prev,
                              preferred_element_type=f32)   # (tile_e, L_PAD)
            new = jnp.maximum(
                jnp.dot(e2epool, wc_ref[...], preferred_element_type=f32)
                + base_ref[pl.ds(row0, tile_e), :], 0.0)
            cur_ref[cur_slot, pl.ds(row0, tile_e), :] = new.astype(bf16)

            # ---- readout fused into the last tile of the last BP phase ----
            @pl.when(jnp.logical_and(phase == max_lv, tile == n_tiles - 1))
            def _finalize():
                cur_fin = cur_ref[max_lv % 2]                # static slot, bf16
                hidden = jnp.maximum(
                    jnp.dot(e2n_ref[...], cur_fin,
                            preferred_element_type=f32), 0.0)         # (N, L_PAD)
                out_lin = jnp.maximum(
                    jnp.dot(hidden, wo_ref[...], preferred_element_type=f32)
                    + bo_ref[...], 0.0)                                # (N, O_PAD)
                out_ref[...] = jnp.maximum(
                    jnp.dot(subg_ref[...], out_lin,
                            preferred_element_type=f32), 0.0)          # (G, O_PAD)

    return kernel


# ----------------------------- wrapper -----------------------------------
def _pad2(a, rows, cols):
    """Zero-pad a 2-D array to (rows, cols).  Exact for this relu pipeline."""
    out = jnp.zeros((rows, cols), jnp.float32)
    return out.at[: a.shape[0], : a.shape[1]].set(a.astype(jnp.float32))


def _pick_tile_e(n_edges, cap=512):
    """Largest multiple-of-16 divisor of n_edges that is <= cap (0 if none)."""
    best = 0
    for t in range(16, min(cap, n_edges) + 1, 16):
        if n_edges % t == 0:
            best = t
    return best


def embed_loopy_bp(node_feat, edge_feat, n2e, e2e, e2n, subg, params, *,
                   max_lv=MAX_LV, tile_e=None, force_tiled=False):
    """Pallas forward pass of EmbedLoopyBP.

    One-time layout prep happens here (outside the kernel): latent/output axes
    are zero-padded to 128 lanes (exact).  Small graphs take a single-step
    fully-VMEM-resident kernel; large graphs stream (tile_e, E) e2e row tiles.
    """
    wn, bn, we, be, wc, bc, wo, bo = params
    n_nodes, n_node_feats = node_feat.shape
    n_edges, n_edge_feats = edge_feat.shape
    n_graphs = subg.shape[0]
    out_dim = wo.shape[1]

    # ---- one-time layout / dtype prep (plumbing, not compute) ----
    wn_p = _pad2(wn, n_node_feats, L_PAD)
    bn_p = _pad2(bn, 1, L_PAD)
    we_p = _pad2(we, n_edge_feats, L_PAD)
    be_p = _pad2(be, 1, L_PAD)
    wc_p = _pad2(wc, L_PAD, L_PAD)
    bc_p = _pad2(bc, 1, L_PAD)
    wo_p = _pad2(wo, L_PAD, O_PAD)
    bo_p = _pad2(bo, 1, O_PAD)

    node_f = node_feat.astype(jnp.float32)
    edge_f = edge_feat.astype(jnp.float32)
    subg_f = subg.astype(jnp.float32)

    use_tiled = force_tiled or (2 * n_edges * n_edges > _TILED_E2E_BYTES_THRESHOLD)

    if not use_tiled:
        # --------- single-step path: no grid, no per-step overhead ----------
        kernel = functools.partial(_loopy_bp_small_kernel, max_lv)
        out_padded = pl.pallas_call(
            kernel,
            out_shape=jax.ShapeDtypeStruct((n_graphs, O_PAD), jnp.float32),
        )(node_f, edge_f,
          n2e.astype(jnp.float32), e2e.astype(jnp.float32),
          e2n.astype(jnp.float32), subg_f,
          wn_p, bn_p, we_p, be_p, wc_p, bc_p, wo_p, bo_p)
        return out_padded[:, :out_dim]

    # ------------------------ tiled / streaming path ------------------------
    if max_lv < 1:
        raise ValueError("tiled path requires max_lv >= 1")
    if tile_e is None:
        tile_e = _pick_tile_e(n_edges)
    if tile_e == 0 or n_edges % tile_e != 0 or tile_e % 16 != 0:
        raise ValueError("tile_e must be a multiple of 16 that divides n_edges")
    n_tiles = n_edges // tile_e

    n2e_b = n2e.astype(jnp.bfloat16)      # 0/1 -> exact in bf16
    e2e_b = e2e.astype(jnp.bfloat16)
    e2n_b = e2n.astype(jnp.bfloat16)

    # phase-aware index maps: only fetch row tiles in phases that read them.
    def edge_rows_map(p, i):              # edge_feat / n2e: read only in phase 0
        return (jnp.where(p == 0, i, n_tiles - 1), 0)

    def e2e_rows_map(p, i):               # e2e: read only in BP phases (p >= 1)
        return (jnp.where(p == 0, 0, i), 0)

    const2 = lambda p, i: (0, 0)

    in_specs = [
        # row-tiled over edge-messages (inner grid axis)
        pl.BlockSpec((tile_e, n_edge_feats), edge_rows_map),      # edge_feat
        pl.BlockSpec((tile_e, n_nodes),      edge_rows_map),      # n2e (bf16)
        # TODO(synk): if the e2e DMA is still exposed at production shapes,
        # add pipeline_mode=pl.Buffered(3) here (VMEM budget permitting).
        pl.BlockSpec((tile_e, n_edges),      e2e_rows_map),       # e2e (bf16)
        # whole-array residents (constant block index -> fetched once)
        pl.BlockSpec((n_nodes, n_node_feats), const2),            # node_feat
        pl.BlockSpec((n_nodes, n_edges),      const2),            # e2n (bf16)
        pl.BlockSpec((n_graphs, n_nodes),     const2),            # subg
        pl.BlockSpec((n_node_feats, L_PAD),   const2),            # wn
        pl.BlockSpec((1, L_PAD),              const2),            # bn
        pl.BlockSpec((n_edge_feats, L_PAD),   const2),            # we
        pl.BlockSpec((1, L_PAD),              const2),            # be
        pl.BlockSpec((L_PAD, L_PAD),          const2),            # wc
        pl.BlockSpec((1, L_PAD),              const2),            # bc
        pl.BlockSpec((L_PAD, O_PAD),          const2),            # wo
        pl.BlockSpec((1, O_PAD),              const2),            # bo
    ]
    # lane-dense (128-wide) output slab; pad is sliced off in the wrapper.
    out_specs = pl.BlockSpec((n_graphs, O_PAD), const2)

    scratch_shapes = [
        pltpu.VMEM((n_nodes, L_PAD), jnp.float32),           # node_lin
        pltpu.VMEM((n_edges, L_PAD), jnp.float32),           # base = msg + bc
        # carry ping-pong in bf16: E*1024 B total with base (v7x 64 MiB aware)
        pltpu.VMEM((2, n_edges, L_PAD), jnp.bfloat16),       # cur ping-pong
    ]

    grid = (max_lv + 1, n_tiles)   # readout fused into the last BP phase

    # advisory cost estimate so XLA can schedule around the custom call
    flops = 2 * (n_nodes * n_node_feats * L_PAD
                 + n_edges * n_edge_feats * L_PAD
                 + n_edges * n_nodes * L_PAD
                 + max_lv * (n_edges * n_edges * L_PAD + n_edges * L_PAD * L_PAD)
                 + n_nodes * n_edges * L_PAD
                 + n_nodes * L_PAD * O_PAD
                 + n_graphs * n_nodes * O_PAD)
    bytes_accessed = int(
        4 * (node_f.size + edge_f.size + subg_f.size
             + wn_p.size + we_p.size + wc_p.size + wo_p.size + 4 * L_PAD
             + n_graphs * O_PAD)
        + 2 * (n2e_b.size + e2n_b.size)
        + 2 * max_lv * e2e_b.size)           # e2e streamed once per BP phase
    cost = pl.CostEstimate(flops=int(flops), transcendentals=0,
                           bytes_accessed=bytes_accessed)

    kernel = _make_loopy_bp_tiled_kernel(tile_e=tile_e, max_lv=max_lv,
                                         n_tiles=n_tiles)
    out_padded = pl.pallas_call(
        kernel,
        out_shape=jax.ShapeDtypeStruct((n_graphs, O_PAD), jnp.float32),
        grid_spec=pltpu.PrefetchScalarGridSpec(
            num_scalar_prefetch=0,
            grid=grid,
            in_specs=in_specs,
            out_specs=out_specs,
            scratch_shapes=scratch_shapes,
        ),
        compiler_params=pltpu.CompilerParams(
            # both grid axes carry state through VMEM scratch (cur/base),
            # so neither may be megacore-"parallel" in this single-call design.
            # TODO(synk): v7x 2-TC split via core_map + VMEM_SHARED carry.
            dimension_semantics=("arbitrary", "arbitrary"),
            # cross-generation budget: under v7x's 64 MiB physical VMEM,
            # above the 16/32 MiB default scoped limit on v5e/v6e.
            vmem_limit_bytes=48 * 1024 * 1024,
        ),
        cost_estimate=cost,
    )(edge_f, n2e_b, e2e_b, node_f, e2n_b, subg_f,
      wn_p, bn_p, we_p, be_p, wc_p, bc_p, wo_p, bo_p)

    # strip the lane padding from the lane-dense output slab
    return out_padded[:, :out_dim]


# -------------------------- reference (pure JAX) -------------------------
def embed_loopy_bp_ref(node_feat, edge_feat, n2e, e2e, e2n, subg, params,
                       max_lv=MAX_LV):
    wn, bn, we, be, wc, bc, wo, bo = params
    node_lin = node_feat @ wn + bn
    edge_lin = edge_feat @ we + be
    input_message = edge_lin + n2e @ node_lin
    cur = jax.nn.relu(input_message)
    for _ in range(max_lv):
        cur = jax.nn.relu((e2e @ cur) @ wc + bc + input_message)
    hidden = jax.nn.relu(e2n @ cur)
    relu_out = jax.nn.relu(hidden @ wo + bo)
    return jax.nn.relu(subg @ relu_out)


# ------------------------------- main ------------------------------------
if __name__ == "__main__":
    key = jax.random.PRNGKey(0)
    ks = jax.random.split(key, 12)

    # features
    node_feat = jax.random.normal(ks[0], (N_NODES, NUM_NODE_FEATS), jnp.float32)
    edge_feat = jax.random.normal(ks[1], (N_EDGES, NUM_EDGE_FEATS), jnp.float32)

    # "sparse" propagation operators, built densely (0/1 incidence-like)
    n2e = (jax.random.uniform(ks[2], (N_EDGES, N_NODES)) < 0.2).astype(jnp.float32)
    e2e = (jax.random.uniform(ks[3], (N_EDGES, N_EDGES)) < 0.1).astype(jnp.float32)
    e2n = (jax.random.uniform(ks[4], (N_NODES, N_EDGES)) < 0.2).astype(jnp.float32)
    subg = (jnp.arange(N_NODES)[None, :] // (N_NODES // N_GRAPHS)
            == jnp.arange(N_GRAPHS)[:, None]).astype(jnp.float32)

    # deterministic parameter init (nn.Linear: weight [out, in], bias [out]);
    # pre-transposed to [in, out] so the kernel does x @ W + b.
    def linear_params(k, in_dim, out_dim):
        kw, kb = jax.random.split(k)
        scale = 1.0 / jnp.sqrt(jnp.float32(in_dim))
        w = jax.random.uniform(kw, (in_dim, out_dim), jnp.float32, -scale, scale)
        b = jax.random.uniform(kb, (1, out_dim), jnp.float32, -scale, scale)
        return w, b

    wn, bn = linear_params(ks[5], NUM_NODE_FEATS, LATENT_DIM)   # w_n2l
    we, be = linear_params(ks[6], NUM_EDGE_FEATS, LATENT_DIM)   # w_e2l
    wc, bc = linear_params(ks[7], LATENT_DIM, LATENT_DIM)       # conv_params
    wo, bo = linear_params(ks[8], LATENT_DIM, OUTPUT_DIM)       # out_params
    params = (wn, bn, we, be, wc, bc, wo, bo)

    ref = embed_loopy_bp_ref(node_feat, edge_feat, n2e, e2e, e2n, subg, params)

    # ---- fast path at demo shapes: single grid step, all VMEM-resident ----
    out = embed_loopy_bp(node_feat, edge_feat, n2e, e2e, e2n, subg, params)
    out = jax.block_until_ready(out)
    assert out.shape == (N_GRAPHS, OUTPUT_DIM)
    assert jnp.allclose(out, ref, atol=1e-4, rtol=1e-4), \
        "small-path mismatch vs JAX reference"

    # ---- also exercise the streaming path production-size graphs take ----
    # (looser tolerance: the dominant e2e dot / carry are bf16 on this path)
    out_tiled = embed_loopy_bp(node_feat, edge_feat, n2e, e2e, e2n, subg,
                               params, force_tiled=True, tile_e=16)
    out_tiled = jax.block_until_ready(out_tiled)
    assert out_tiled.shape == (N_GRAPHS, OUTPUT_DIM)
    assert jnp.allclose(out_tiled, ref, atol=5e-2, rtol=5e-2), \
        "tiled-path mismatch vs JAX reference"

    print("KERNEL_OK")
</pallas_src>

<mosaic_0001>
module attributes {stable_mosaic.version = 11 : i64} {
  func.func @_loopy_bp_small_kernel(%arg0: memref<16x8xf32, #tpu.memory_space<vmem>>, %arg1: memref<32x4xf32, #tpu.memory_space<vmem>>, %arg2: memref<32x16xf32, #tpu.memory_space<vmem>>, %arg3: memref<32x32xf32, #tpu.memory_space<vmem>>, %arg4: memref<16x32xf32, #tpu.memory_space<vmem>>, %arg5: memref<2x16xf32, #tpu.memory_space<vmem>>, %arg6: memref<8x128xf32, #tpu.memory_space<vmem>>, %arg7: memref<1x128xf32, #tpu.memory_space<vmem>>, %arg8: memref<4x128xf32, #tpu.memory_space<vmem>>, %arg9: memref<1x128xf32, #tpu.memory_space<vmem>>, %arg10: memref<128x128xf32, #tpu.memory_space<vmem>>, %arg11: memref<1x128xf32, #tpu.memory_space<vmem>>, %arg12: memref<128x128xf32, #tpu.memory_space<vmem>>, %arg13: memref<1x128xf32, #tpu.memory_space<vmem>>, %arg14: memref<2x128xf32, #tpu.memory_space<vmem>>) attributes {dimension_semantics = [], scalar_prefetch = 0 : i64, scratch_operands = 0 : i64, tpu.core_type = #tpu.core_type<tc>} {
    %c0 = arith.constant 0 : index
    %c0_0 = arith.constant 0 : index
    %0 = vector.load %arg0[%c0, %c0_0] : memref<16x8xf32, #tpu.memory_space<vmem>>, vector<16x8xf32>
    %c0_1 = arith.constant 0 : index
    %c0_2 = arith.constant 0 : index
    %1 = vector.load %arg6[%c0_1, %c0_2] : memref<8x128xf32, #tpu.memory_space<vmem>>, vector<8x128xf32>
    %cst = arith.constant dense<0.000000e+00> : vector<16x128xf32>
    %2 = tpu.matmul %0, %1, %cst {dimension_numbers = #tpu.dot_dimension_numbers<[1], [0], [0], [1], [0, 0, 1, 1], [], []>} : vector<16x8xf32>, vector<8x128xf32>, vector<16x128xf32> -> vector<16x128xf32>
    %c0_3 = arith.constant 0 : index
    %c0_4 = arith.constant 0 : index
    %3 = vector.load %arg7[%c0_3, %c0_4] : memref<1x128xf32, #tpu.memory_space<vmem>>, vector<1x128xf32>
    %4 = vector.broadcast %3 : vector<1x128xf32> to vector<16x128xf32>
    %5 = arith.addf %2, %4 : vector<16x128xf32>
    %c0_5 = arith.constant 0 : index
    %c0_6 = arith.constant 0 : index
    %6 = vector.load %arg1[%c0_5, %c0_6] : memref<32x4xf32, #tpu.memory_space<vmem>>, vector<32x4xf32>
    %c0_7 = arith.constant 0 : index
    %c0_8 = arith.constant 0 : index
    %7 = vector.load %arg8[%c0_7, %c0_8] : memref<4x128xf32, #tpu.memory_space<vmem>>, vector<4x128xf32>
    %cst_9 = arith.constant dense<0.000000e+00> : vector<32x128xf32>
    %8 = tpu.matmul %6, %7, %cst_9 {dimension_numbers = #tpu.dot_dimension_numbers<[1], [0], [0], [1], [0, 0, 1, 1], [], []>} : vector<32x4xf32>, vector<4x128xf32>, vector<32x128xf32> -> vector<32x128xf32>
    %c0_10 = arith.constant 0 : index
    %c0_11 = arith.constant 0 : index
    %9 = vector.load %arg9[%c0_10, %c0_11] : memref<1x128xf32, #tpu.memory_space<vmem>>, vector<1x128xf32>
    %10 = vector.broadcast %9 : vector<1x128xf32> to vector<32x128xf32>
    %11 = arith.addf %8, %10 : vector<32x128xf32>
    %c0_12 = arith.constant 0 : index
    %c0_13 = arith.constant 0 : index
    %12 = vector.load %arg2[%c0_12, %c0_13] : memref<32x16xf32, #tpu.memory_space<vmem>>, vector<32x16xf32>
    %cst_14 = arith.constant dense<0.000000e+00> : vector<32x128xf32>
    %13 = tpu.matmul %12, %5, %cst_14 {dimension_numbers = #tpu.dot_dimension_numbers<[1], [0], [0], [1], [0, 0, 1, 1], [], []>} : vector<32x16xf32>, vector<16x128xf32>, vector<32x128xf32> -> vector<32x128xf32>
    %14 = arith.addf %11, %13 : vector<32x128xf32>
    %c0_15 = arith.constant 0 : index
    %c0_16 = arith.constant 0 : index
    %15 = vector.load %arg11[%c0_15, %c0_16] : memref<1x128xf32, #tpu.memory_space<vmem>>, vector<1x128xf32>
    %16 = vector.broadcast %15 : vector<1x128xf32> to vector<32x128xf32>
    %17 = arith.addf %14, %16 : vector<32x128xf32>
    %cst_17 = arith.constant 0.000000e+00 : f32
    %18 = vector.broadcast %cst_17 : f32 to vector<32x128xf32>
    %19 = arith.maximumf %14, %18 : vector<32x128xf32>
    %c0_i32 = arith.constant 0 : i32
    %c0_18 = arith.constant 0 : index
    %c0_19 = arith.constant 0 : index
    %20 = vector.load %arg3[%c0_18, %c0_19] : memref<32x32xf32, #tpu.memory_space<vmem>>, vector<32x32xf32>
    %cst_20 = arith.constant dense<0.000000e+00> : vector<32x128xf32>
    %21 = tpu.matmul %20, %19, %cst_20 {dimension_numbers = #tpu.dot_dimension_numbers<[1], [0], [0], [1], [0, 0, 1, 1], [], []>} : vector<32x32xf32>, vector<32x128xf32>, vector<32x128xf32> -> vector<32x128xf32>
    %c0_21 = arith.constant 0 : index
    %c0_22 = arith.constant 0 : index
    %22 = vector.load %arg10[%c0_21, %c0_22] : memref<128x128xf32, #tpu.memory_space<vmem>>, vector<128x128xf32>
    %cst_23 = arith.constant dense<0.000000e+00> : vector<32x128xf32>
    %23 = tpu.matmul %21, %22, %cst_23 {dimension_numbers = #tpu.dot_dimension_numbers<[1], [0], [0], [1], [0, 0, 1, 1], [], []>} : vector<32x128xf32>, vector<128x128xf32>, vector<32x128xf32> -> vector<32x128xf32>
    %24 = arith.addf %23, %17 : vector<32x128xf32>
    %cst_24 = arith.constant 0.000000e+00 : f32
    %25 = vector.broadcast %cst_24 : f32 to vector<32x128xf32>
    %26 = arith.maximumf %24, %25 : vector<32x128xf32>
    %c1_i32 = arith.constant 1 : i32
    %c0_25 = arith.constant 0 : index
    %c0_26 = arith.constant 0 : index
    %27 = vector.load %arg3[%c0_25, %c0_26] : memref<32x32xf32, #tpu.memory_space<vmem>>, vector<32x32xf32>
    %cst_27 = arith.constant dense<0.000000e+00> : vector<32x128xf32>
    %28 = tpu.matmul %27, %26, %cst_27 {dimension_numbers = #tpu.dot_dimension_numbers<[1], [0], [0], [1], [0, 0, 1, 1], [], []>} : vector<32x32xf32>, vector<32x128xf32>, vector<32x128xf32> -> vector<32x128xf32>
    %c0_28 = arith.constant 0 : index
    %c0_29 = arith.constant 0 : index
    %29 = vector.load %arg10[%c0_28, %c0_29] : memref<128x128xf32, #tpu.memory_space<vmem>>, vector<128x128xf32>
    %cst_30 = arith.constant dense<0.000000e+00> : vector<32x128xf32>
    %30 = tpu.matmul %28, %29, %cst_30 {dimension_numbers = #tpu.dot_dimension_numbers<[1], [0], [0], [1], [0, 0, 1, 1], [], []>} : vector<32x128xf32>, vector<128x128xf32>, vector<32x128xf32> -> vector<32x128xf32>
    %31 = arith.addf %30, %17 : vector<32x128xf32>
    %cst_31 = arith.constant 0.000000e+00 : f32
    %32 = vector.broadcast %cst_31 : f32 to vector<32x128xf32>
    %33 = arith.maximumf %31, %32 : vector<32x128xf32>
    %c2_i32 = arith.constant 2 : i32
    %c0_32 = arith.constant 0 : index
    %c0_33 = arith.constant 0 : index
    %34 = vector.load %arg3[%c0_32, %c0_33] : memref<32x32xf32, #tpu.memory_space<vmem>>, vector<32x32xf32>
    %cst_34 = arith.constant dense<0.000000e+00> : vector<32x128xf32>
    %35 = tpu.matmul %34, %33, %cst_34 {dimension_numbers = #tpu.dot_dimension_numbers<[1], [0], [0], [1], [0, 0, 1, 1], [], []>} : vector<32x32xf32>, vector<32x128xf32>, vector<32x128xf32> -> vector<32x128xf32>
    %c0_35 = arith.constant 0 : index
    %c0_36 = arith.constant 0 : index
    %36 = vector.load %arg10[%c0_35, %c0_36] : memref<128x128xf32, #tpu.memory_space<vmem>>, vector<128x128xf32>
    %cst_37 = arith.constant dense<0.000000e+00> : vector<32x128xf32>
    %37 = tpu.matmul %35, %36, %cst_37 {dimension_numbers = #tpu.dot_dimension_numbers<[1], [0], [0], [1], [0, 0, 1, 1], [], []>} : vector<32x128xf32>, vector<128x128xf32>, vector<32x128xf32> -> vector<32x128xf32>
    %38 = arith.addf %37, %17 : vector<32x128xf32>
    %cst_38 = arith.constant 0.000000e+00 : f32
    %39 = vector.broadcast %cst_38 : f32 to vector<32x128xf32>
    %40 = arith.maximumf %38, %39 : vector<32x128xf32>
    %c0_39 = arith.constant 0 : index
    %c0_40 = arith.constant 0 : index
    %41 = vector.load %arg4[%c0_39, %c0_40] : memref<16x32xf32, #tpu.memory_space<vmem>>, vector<16x32xf32>
    %cst_41 = arith.constant dense<0.000000e+00> : vector<16x128xf32>
    %42 = tpu.matmul %41, %40, %cst_41 {dimension_numbers = #tpu.dot_dimension_numbers<[1], [0], [0], [1], [0, 0, 1, 1], [], []>} : vector<16x32xf32>, vector<32x128xf32>, vector<16x128xf32> -> vector<16x128xf32>
    %cst_42 = arith.constant 0.000000e+00 : f32
    %43 = vector.broadcast %cst_42 : f32 to vector<16x128xf32>
    %44 = arith.maximumf %42, %43 : vector<16x128xf32>
    %c0_43 = arith.constant 0 : index
    %c0_44 = arith.constant 0 : index
    %45 = vector.load %arg12[%c0_43, %c0_44] : memref<128x128xf32, #tpu.memory_space<vmem>>, vector<128x128xf32>
    %cst_45 = arith.constant dense<0.000000e+00> : vector<16x128xf32>
    %46 = tpu.matmul %44, %45, %cst_45 {dimension_numbers = #tpu.dot_dimension_numbers<[1], [0], [0], [1], [0, 0, 1, 1], [], []>} : vector<16x128xf32>, vector<128x128xf32>, vector<16x128xf32> -> vector<16x128xf32>
    %c0_46 = arith.constant 0 : index
    %c0_47 = arith.constant 0 : index
    %47 = vector.load %arg13[%c0_46, %c0_47] : memref<1x128xf32, #tpu.memory_space<vmem>>, vector<1x128xf32>
    %48 = vector.broadcast %47 : vector<1x128xf32> to vector<16x128xf32>
    %49 = arith.addf %46, %48 : vector<16x128xf32>
    %cst_48 = arith.constant 0.000000e+00 : f32
    %50 = vector.broadcast %cst_48 : f32 to vector<16x128xf32>
    %51 = arith.maximumf %49, %50 : vector<16x128xf32>
    %c0_49 = arith.constant 0 : index
    %c0_50 = arith.constant 0 : index
    %52 = vector.load %arg5[%c0_49, %c0_50] : memref<2x16xf32, #tpu.memory_space<vmem>>, vector<2x16xf32>
    %cst_51 = arith.constant dense<0.000000e+00> : vector<2x128xf32>
    %53 = tpu.matmul %52, %51, %cst_51 {dimension_numbers = #tpu.dot_dimension_numbers<[1], [0], [0], [1], [0, 0, 1, 1], [], []>} : vector<2x16xf32>, vector<16x128xf32>, vector<2x128xf32> -> vector<2x128xf32>
    %cst_52 = arith.constant 0.000000e+00 : f32
    %54 = vector.broadcast %cst_52 : f32 to vector<2x128xf32>
    %55 = arith.maximumf %53, %54 : vector<2x128xf32>
    %c0_53 = arith.constant 0 : index
    %c0_54 = arith.constant 0 : index
    %56 = vector.load %arg14[%c0_53, %c0_54] : memref<2x128xf32, #tpu.memory_space<vmem>>, vector<2x128xf32>
    tpu.vector_store %arg14[%c0_53, %c0_54], %55 {strides = array<i32>} : memref<2x128xf32, #tpu.memory_space<vmem>>, vector<2x128xf32>,
    return
  }
}

</mosaic_0001>

<bundles_post_ra>
// kernel: tpu_custom_call.1
= control target key start
LH: loop header
LB: loop body
LE: loop exit
PB: predicated region body
PF: predicated region fallthrough
CT: control target
= control target key end

     0   :  { %19 = vsyncpa [#allocation3], 0  ;;  %s2430_s0 = inlined_call_operand.vmem [shape: f32[16,8], index: 0, kind: input, shape index: {}]   ;;  %s2431_s1 = inlined_call_operand.vmem [shape: f32[32,4], index: 1, kind: input, shape index: {}]   ;;  %s2432_s2 = inlined_call_operand.vmem [shape: f32[32,16], index: 2, kind: input, shape index: {}]   ;;  %s2433_s3 = inlined_call_operand.hbm [shape: f32[32,32], index: 3, kind: input, shape index: {}]   ;;  %s2434_s4 = inlined_call_operand.vmem [shape: f32[16,32], index: 4, kind: input, shape index: {}]   ;;  %s2435_s5 = inlined_call_operand.hbm [shape: f32[2,16], index: 5, kind: input, shape index: {}]   ;;  %s2436_s6 = inlined_call_operand.hbm [shape: f32[8,128], index: 6, kind: input, shape index: {}]   ;;  %s2437_s7 = inlined_call_operand.vmem [shape: f32[1,128], index: 7, kind: input, shape index: {}]   ;;  %s2438_s8 = inlined_call_operand.hbm [shape: f32[4,128], index: 8, kind: input, shape index: {}]   ;;  %s2439_s9 = inlined_call_operand.hbm [shape: f32[1,128], index: 9, kind: input, shape index: {}]   ;;  %s2440_s10 = inlined_call_operand.vmem [shape: f32[128,128], index: 10, kind: input, shape index: {}]   ;;  %s2441_s11 = inlined_call_operand.vmem [shape: f32[1,128], index: 11, kind: input, shape index: {}]   ;;  %s2442_s12 = inlined_call_operand.hbm [shape: f32[128,128], index: 12, kind: input, shape index: {}]   ;;  %s2443_s13 = inlined_call_operand.vmem [shape: f32[1,128], index: 13, kind: input, shape index: {}]   ;;  %s2444_s14 = inlined_call_operand.hbm [shape: f32[2,128], index: 14, kind: output, shape index: {}]  }
   0x1   :  { %20 = vsyncpa [#allocation6], 0 }
   0x2   :  { %21 = vsyncpa [#allocation9], 0 }
   0x3   :  { %22 = vsyncpa [#allocation12], 0 }
   0x4   :  { %23 = vsyncpa [#allocation4], 0  ;;  %s2021_s29 = smov [#allocation5]   ;;  %s2022_s15 = smov [#allocation8]  }
   0x5   :  { %s50_s30 = sshll.u32 %s2021_s29, 4  ;;  %s72_s16 = sshll.u32 %s2022_s15, 4  ;;  %s51_s30 = int_to_ptr.vmem [resolvable:$true] %s50_s30  ;;  %s73_s16 = int_to_ptr.vmem [resolvable:$true] %s72_s16 }
   0x6   :  { %s1857_s19 = scalar_lea.hbm %s2435_s5, 32 }
   0x7   :  { %p1858_p0 = scmp.ne.s32.totalorder %s2435_s5, %s1857_s19  ;;  %p1861_p1 = scmp.lt.u32.totalorder %s1857_s19, %s2435_s5 }
   0x9   :  { %p1863_p2 = pnand %p1861_p1, %p1858_p0 }
   0xb   :  { %1866 = shalt.err (!%p1863_p2)
}
   0xc   :  { %s1867_s24 = scalar_lea.vmem %s51_s30, 32  ;;  %p1872_p4 = scmp.lt.s32.totalorder %s51_s30, %s51_s30 }
   0xd   :  { %p1868_p3 = scmp.ne.s32.totalorder %s51_s30, %s1867_s24  ;;  %p1873_p5 = scmp.lt.s32.totalorder %s1867_s24, %s1867_s24 }
   0xf   :  { %p1874_p6 = por %p1873_p5, %p1872_p4 }
  0x11   :  { %p1875_p7 = pnand %p1874_p6, %p1868_p3 }
  0x13   :  { %1878 = shalt.err (!%p1875_p7)
}
  0x14   :  { %53 = dma.hbm_to_vmem [thread:$0]  %s2435_s5, 32, %s51_s30, [#allocation6]  }
  0x15   :  { %s1879_s29 = scalar_lea.hbm %s2438_s8, 64 }
  0x16   :  { %p1880_p8 = scmp.ne.s32.totalorder %s2438_s8, %s1879_s29  ;;  %p1883_p9 = scmp.lt.u32.totalorder %s1879_s29, %s2438_s8 }
  0x18   :  { %p1885_p10 = pnand %p1883_p9, %p1880_p8 }
  0x1a   :  { %1888 = shalt.err (!%p1885_p10)
}
  0x1b   :  { %s1889_s20 = scalar_lea.vmem %s73_s16, 64  ;;  %p1894_p12 = scmp.lt.s32.totalorder %s73_s16, %s73_s16 }
  0x1c   :  { %p1890_p11 = scmp.ne.s32.totalorder %s73_s16, %s1889_s20  ;;  %p1895_p13 = scmp.lt.s32.totalorder %s1889_s20, %s1889_s20 }
  0x1e   :  { %p1896_p0 = por %p1895_p13, %p1894_p12 }
  0x20   :  { %p1897_p1 = pnand %p1896_p0, %p1890_p11 }
  0x22   :  { %1900 = shalt.err (!%p1897_p1)
}
  0x23   :  { %75 = dma.hbm_to_vmem [thread:$0]  %s2438_s8, 64, %s73_s16, [#allocation9]  }
  0x24   :  { %s2023_s21 = smov [#allocation2]   ;;  %s1901_s25 = scalar_lea.hbm %s2433_s3, 512 }
  0x25   :  { %s35_s22 = sshll.u32 %s2023_s21, 4  ;;  %p1902_p2 = scmp.ne.s32.totalorder %s2433_s3, %s1901_s25  ;;  %s36_s22 = int_to_ptr.vmem [resolvable:$true] %s35_s22 }
  0x26   :  { %p1905_p3 = scmp.lt.u32.totalorder %s1901_s25, %s2433_s3 }
  0x28   :  { %p1907_p4 = pnand %p1905_p3, %p1902_p2 }
  0x2a   :  { %1910 = shalt.err (!%p1907_p4)
}
  0x2b   :  { %s1911_s15 = scalar_lea.vmem %s36_s22, 512  ;;  %p1916_p6 = scmp.lt.s32.totalorder %s36_s22, %s36_s22 }
  0x2c   :  { %p1912_p5 = scmp.ne.s32.totalorder %s36_s22, %s1911_s15  ;;  %p1917_p7 = scmp.lt.s32.totalorder %s1911_s15, %s1911_s15 }
  0x2e   :  { %p1918_p8 = por %p1917_p7, %p1916_p6 }
  0x30   :  { %p1919_p9 = pnand %p1918_p8, %p1912_p5 }
  0x32   :  { %1922 = shalt.err (!%p1919_p9)
}
  0x33   :  { %s2024_s8 = smov 128   ;;  %s2025_s16 = smov 8  }
  0x34   :  { %41 = dma.hbm_to_vmem [thread:$0]  %s2433_s3, 512, %s36_s22, [#allocation3], %s2024_s8, %s2024_s8, %s2025_s16  }
  0x35   :  { %s2026_s19 = smov [#allocation7]   ;;  %s2027_s5 = smov [#allocation10]  }
  0x36   :  { %s60_s20 = sshll.u32 %s2026_s19, 4  ;;  %s82_s30 = sshll.u32 %s2027_s5, 4  ;;  %s61_s20 = int_to_ptr.vmem [resolvable:$true] %s60_s20  ;;  %s83_s30 = int_to_ptr.vmem [resolvable:$true] %s82_s30 }
  0x37   :  { %s1923_s24 = scalar_lea.hbm %s2436_s6, 128 }
  0x38   :  { %p1924_p10 = scmp.ne.s32.totalorder %s2436_s6, %s1923_s24  ;;  %p1927_p11 = scmp.lt.u32.totalorder %s1923_s24, %s2436_s6 }
  0x3a   :  { %p1929_p12 = pnand %p1927_p11, %p1924_p10 }
  0x3c   :  { %1932 = shalt.err (!%p1929_p12)
}
  0x3d   :  { %s1933_s3 = scalar_lea.vmem %s61_s20, 128  ;;  %p1938_p0 = scmp.lt.s32.totalorder %s61_s20, %s61_s20 }
  0x3e   :  { %p1934_p13 = scmp.ne.s32.totalorder %s61_s20, %s1933_s3  ;;  %p1939_p1 = scmp.lt.s32.totalorder %s1933_s3, %s1933_s3 }
  0x40   :  { %p1940_p2 = por %p1939_p1, %p1938_p0 }
  0x42   :  { %p1941_p3 = pnand %p1940_p2, %p1934_p13 }
  0x44   :  { %1944 = shalt.err (!%p1941_p3)
}
  0x45   :  { %63 = dma.hbm_to_vmem [thread:$0]  %s2436_s6, 128, %s61_s20, [#allocation6]  }
  0x46   :  { %s1945_s18 = scalar_lea.hbm %s2439_s9, 16 }
  0x47   :  { %p1946_p4 = scmp.ne.s32.totalorder %s2439_s9, %s1945_s18  ;;  %p1949_p5 = scmp.lt.u32.totalorder %s1945_s18, %s2439_s9 }
  0x49   :  { %p1951_p6 = pnand %p1949_p5, %p1946_p4 }
  0x4b   :  { %1954 = shalt.err (!%p1951_p6)
}
  0x4c   :  { %s1955_s24 = scalar_lea.vmem %s83_s30, 16  ;;  %s1959_s25 = scalar_lea.vmem %s83_s30, 32 }
  0x4d   :  { %p1956_p7 = scmp.ne.s32.totalorder %s83_s30, %s1955_s24  ;;  %p1960_p8 = scmp.lt.s32.totalorder %s83_s30, %s83_s30 }
  0x4e   :  { %p1961_p9 = scmp.lt.s32.totalorder %s1959_s25, %s1955_s24 }
  0x50   :  { %p1962_p10 = por %p1961_p9, %p1960_p8 }
  0x52   :  { %p1963_p11 = pnand %p1962_p10, %p1956_p7 }
  0x54   :  { %1966 = shalt.err (!%p1963_p11)
}
  0x55   :  { %85 = dma.hbm_to_vmem [thread:$0]  %s2439_s9, 16, %s83_s30, [#allocation9]  }
  0x56   :  { %s2028_s26 = smov [#allocation11]   ;;  %s1967_s22 = scalar_lea.hbm %s2442_s12, 2048 }
  0x57   :  { %s95_s27 = sshll.u32 %s2028_s26, 4  ;;  %p1968_p12 = scmp.ne.s32.totalorder %s2442_s12, %s1967_s22  ;;  %s96_s27 = int_to_ptr.vmem [resolvable:$true] %s95_s27 }
  0x58   :  { %p1971_p13 = scmp.lt.u32.totalorder %s1967_s22, %s2442_s12 }
  0x5a   :  { %p1973_p0 = pnand %p1971_p13, %p1968_p12 }
  0x5c   :  { %1976 = shalt.err (!%p1973_p0)
}
  0x5d   :  { %s1977_s19 = scalar_lea.vmem %s96_s27, 2048  ;;  %p1982_p2 = scmp.lt.s32.totalorder %s96_s27, %s96_s27 }
  0x5e   :  { %p1978_p1 = scmp.ne.s32.totalorder %s96_s27, %s1977_s19  ;;  %p1983_p3 = scmp.lt.s32.totalorder %s1977_s19, %s1977_s19 }
  0x60   :  { %p1984_p4 = por %p1983_p3, %p1982_p2 }
  0x62   :  { %p1985_p5 = pnand %p1984_p4, %p1978_p1 }
  0x64   :  { %1988 = shalt.err (!%p1985_p5)
}
  0x65   :  { %101 = dma.hbm_to_vmem [thread:$0]  %s2442_s12, 2048, %s96_s27, [#allocation12], %s2024_s8, %s2024_s8, %s2025_s16  }
  0x66   :  { %2011 = dma.done.wait [#allocation3], 512  }
  0x67   :  { %2012 = vsyncadd [#allocation3], 4294966784 }
  0x68   :  { %2013 = dma.done.wait [#allocation6], 160  }
  0x69   :  { %2014 = vsyncadd [#allocation6], 4294967136 }
  0x6a   :  { %2015 = dma.done.wait [#allocation9], 80  }
  0x6b   :  { %2016 = vsyncadd [#allocation9], 4294967216 }
  0x6c   :  { %2017 = dma.done.wait [#allocation12], 2048  }
  0x6d   :  { %2018 = vsyncadd [#allocation12], 4294965248  ;;  %vm132_vm0 = vcmask 64512   ;;  %v124_v0 = vld [vmem:[#allocation7] sm:$0xff]  ;;  %v218_v3 = vld [vmem:[#allocation8] sm:$0xf] }
  0x6e   :  { %v122_v1 = vld [vmem:[%s2430_s0] sm:$0xff]  ;;  %v123_v2 = vld [vmem:[%s2430_s0 + $0x8] sm:$0xff]  ;;  %1438 = vmatprep.subr.mxu0 %v124_v0  ;;  %vm239_vm1 = vcmask 1043456   ;;  %vm226_vm2 = vcmask 31744   ;;  %v216_v6 = vld [vmem:[%s2431_s1 + $0x10] sm:$0xff]  ;;  %vm332_vm3 = vcmask 130048  }
  0x6f   :  { %1440 = vmatprep.mubr.msk.f32.mxu0 %vm132_vm0, %v122_v1  ;;  %1439 = vmatpush3.msra.mxu0 %v124_v0  ;;  %v214_v4 = vld [vmem:[%s2431_s1] sm:$0xff]  ;;  %v215_v5 = vld [vmem:[%s2431_s1 + $0x8] sm:$0xff]  ;;  %v217_v7 = vld [vmem:[%s2431_s1 + $0x18] sm:$0xff]  ;;  %vm453_vm4 = vcmask 261120   ;;  %vm2030_vm5 = vmmov 0   ;;  %s2032_s25 = smov [#allocation13]  }
  0x70   :  { %1441 = vmatmul.mubr.msk.f32.vlgmr.msra.gmra.mrb[0].mxu0 %vm132_vm0, %v123_v2  ;;  %1443 = vmatprep.subr.msk.mxu1 %vm239_vm1, %v218_v3  ;;  %v328_v8 = vld [vmem:[%s2432_s2] sm:$0xff]  ;;  %v329_v15 = vld [vmem:[%s2432_s2 + $0x8] sm:$0xff]  ;;  %v330_v16 = vld [vmem:[%s2432_s2 + $0x10] sm:$0xff]  ;;  %s1271_s0 = sshll.u32 %s2032_s25, 4  ;;  %s1272_s0 = int_to_ptr.vmem [resolvable:$true] %s1271_s0 }
  0x71   :  { %1444 = vmatpush3.msk.msra.mxu1 %vm239_vm1, %v218_v3  ;;  %1445 = vmatprep.mubr.msk.f32.mxu1 %vm226_vm2, %v214_v4  ;;  %v1283_v9 = vld [vmem:[%s2437_s7] ss:$0 sm:$0xff]  ;;  %v331_v17 = vld [vmem:[%s2432_s2 + $0x18] sm:$0xff]  ;;  %v1286_v19 = vld [vmem:[#allocation10] ss:$0 sm:$0xff]  ;;  %s1989_s6 = scalar_lea.vmem %s1272_s0, 32  ;;  %p1994_p7 = scmp.lt.s32.totalorder %s1272_s0, %s1272_s0 }
  0x72   :  { %1446 = vmatmul.mubr.msk.f32.vlgmr.msra.gmra.mrb[0].mxu1 %vm226_vm2, %v215_v5  ;;  %v2223_v18 = vld [vmem:[#allocation2] sm:$0xff]  ;;  %v552_v33 = vld [vmem:[%s2440_s10 + $0x8] sm:$0xff]  ;;  %v553_v37 = vld [vmem:[%s2440_s10 + $0x10] sm:$0xff]  ;;  %p1990_p6 = scmp.ne.s32.totalorder %s1272_s0, %s1989_s6  ;;  %p1995_p8 = scmp.lt.s32.totalorder %s1989_s6, %s1989_s6 }
  0x73   :  { %1448 = vmatprep.mubr.msk.f32.mxu1 %vm226_vm2, %v216_v6  ;;  %1469 = vmatprep.mubr.msk.f32.mxu0 %vm453_vm4, %v2223_v18  ;;  %v551_v32 = vld [vmem:[%s2440_s10] sm:$0xff]  ;;  %v554_v38 = vld [vmem:[%s2440_s10 + $0x18] sm:$0xff]  ;;  %v2255_v39 = vld [vmem:[#allocation2 + $0x8] sm:$0xff] }
  0x74   :  { %v2247_v36 = vpack.c.bf16 %v552_v33, %v551_v32  ;;  %v2257_v40 = vld [vmem:[#allocation2 + $0x10] sm:$0xff]  ;;  %v2260_v41 = vpack.c.bf16 %v554_v38, %v553_v37  ;;  %v555_v42 = vld [vmem:[%s2440_s10 + $0x20] sm:$0xff]  ;;  %v556_v43 = vld [vmem:[%s2440_s10 + $0x28] sm:$0xff]  ;;  %p1996_p9 = por %p1995_p8, %p1994_p7 }
  0x75   :  { %v2272_v44 = vld [vmem:[#allocation2 + $0x18] sm:$0xff]  ;;  %v2276_v45 = vpack.c.bf16 %v556_v43, %v555_v42  ;;  %v557_v46 = vld [vmem:[%s2440_s10 + $0x30] sm:$0xff]  ;;  %v559_v49 = vld [vmem:[%s2440_s10 + $0x40] sm:$0xff] }
  0x76   :  { %1449 = vmatmul.mubr.msk.f32.gmra.mrb[2].mxu1 %vm226_vm2, %v217_v7  ;;  %v558_v47 = vld [vmem:[%s2440_s10 + $0x38] sm:$0xff]  ;;  %v560_v50 = vld [vmem:[%s2440_s10 + $0x48] sm:$0xff]  ;;  %v561_v52 = vld [vmem:[%s2440_s10 + $0x50] sm:$0xff]  ;;  %p1997_p10 = pnand %p1996_p9, %p1990_p6 }
  0x77   :  { %1455 = vmatprep.mubr.msk.f32.mxu1 %vm332_vm3, %v328_v8  ;;  %v2288_v48 = vpack.c.bf16 %v558_v47, %v557_v46  ;;  %v2298_v51 = vpack.c.bf16 %v560_v50, %v559_v49  ;;  %v562_v53 = vld [vmem:[%s2440_s10 + $0x58] sm:$0xff]  ;;  %v563_v55 = vld [vmem:[%s2440_s10 + $0x60] sm:$0xff]  ;;  %v564_v56 = vld [vmem:[%s2440_s10 + $0x68] sm:$0xff] }
  0x78   :  { %v2308_v54 = vpack.c.bf16 %v562_v53, %v561_v52  ;;  %v2318_v57 = vpack.c.bf16 %v564_v56, %v563_v55  ;;  %v565_v58 = vld [vmem:[%s2440_s10 + $0x70] sm:$0xff]  ;;  %v566_v59 = vld [vmem:[%s2440_s10 + $0x78] sm:$0xff]  ;;  %v1296_v1 = vld [vmem:[%s2441_s11] ss:$0 sm:$0xff] }
  0x79   :  { %v2328_v60 = vpack.c.bf16 %v566_v59, %v565_v58  ;;  %v1004_v42 = vld [vmem:[%s2434_s4] sm:$0xff]  ;;  %v1089_v55 = vld [vmem:[#allocation11] sm:$0xff]  ;;  %v1090_v56 = vld [vmem:[#allocation11 + $0x8] sm:$0xff] }
  0x7a   :  { %v1802_v59 = vpack.c.bf16 %v1090_v56, %v1089_v55 }
 0x143   :  { %v1442_v10 = vpop.f32.mrb[0].mxu0 }
 0x144   :  { %v211_v11 = vadd.f32 %v1442_v10, %v1283_v9  ;;  %v205_v12 = vpop.f32.mrb[1].mxu0 }
 0x145   :  { %v206_v13 = vadd.f32 %v1283_v9, %v205_v12 }
 0x147   :  { %v1670_v14 = vpack.c.bf16 %v211_v11, %v206_v13 }
 0x149   :  { %1671 = vmatprep.subr.bf16.mxu1 %v1670_v14 }
 0x14a   :  { %1673 = vmatpush3.bf16.msra.mxu1 %v1670_v14 }
 0x14d   :  { %1456 = vmatmul.mubr.msk.f32.vlgmr.msra.gmra.mrb[0].mxu1 %vm332_vm3, %v329_v15 }
 0x14e   :  { %1458 = vmatprep.mubr.msk.f32.mxu1 %vm332_vm3, %v330_v16 }
 0x151   :  { %1459 = vmatmul.mubr.msk.f32.gmra.mrb[2].mxu1 %vm332_vm3, %v331_v17 }
 0x152   :  { %1521 = vmatprep.mubr.msk.f32.mxu1 %vm453_vm4, %v2223_v18 }
 0x220   :  { %v1457_v20 = vpop.f32.mrb[0].mxu1 }
 0x221   :  { %v2229_v21 = vadd.f32 %v1457_v20, %v1286_v19  ;;  %v411_v22 = vpop.f32.mrb[1].mxu1 }
 0x222   :  { %v2231_v23 = vadd.f32 %v1286_v19, %v411_v22 }
 0x223   :  { %v446_v24 = vmax.f32 %v2229_v21, 0.0  ;;  %v2339_v2 = vadd.f32 %v2229_v21, %v1296_v1 }
 0x224   :  { %v445_v25 = vmax.f32 %v2231_v23, 0.0  ;;  %v1460_v26 = vpop.f32.mrb[2].mxu1  ;;  %v2342_v3 = vadd.f32 %v2231_v23, %v1296_v1 }
 0x225   :  { %v2235_v27 = vadd.f32 %v1460_v26, %v1286_v19  ;;  %v421_v28 = vpop.f32.mrb[3].mxu1 }
 0x226   :  { %v2237_v29 = vadd.f32 %v1286_v19, %v421_v28  ;;  %v1674_v30 = vpack.c.bf16 %v446_v24, %v445_v25 }
 0x227   :  { %v448_v31 = vmax.f32 %v2235_v27, 0.0  ;;  %v2347_v8 = vadd.f32 %v2235_v27, %v1296_v1 }
 0x228   :  { %v447_v34 = vmax.f32 %v2237_v29, 0.0  ;;  %1675 = vmatprep.subr.bf16.mxu0 %v1674_v30  ;;  %v2350_v10 = vadd.f32 %v2237_v29, %v1296_v1  ;;  %v1094_v1 = vld [vmem:[#allocation11 + $0x28] sm:$0xff] }
 0x229   :  { %1677 = vmatpush3.bf16.msra.mxu0 %v1674_v30 }
 0x22a   :  { %v1678_v35 = vpack.c.bf16 %v448_v31, %v447_v34 }
 0x22c   :  { %1679 = vmatprep.subr.bf16.mxu0 %v1678_v35 }
 0x22d   :  { %1681 = vmatpush3.bf16.msra.mxu0 %v1678_v35 }
 0x22e   :  { %1683 = vmatprep.subr.bf16.mxu0 %v2247_v36 }
 0x230   :  { %1470 = vmatmul.mubr.msk.f32.vlgmr.msra.gmra.mrb[2].mxu0 %vm453_vm4, %v2255_v39 }
 0x231   :  { %1472 = vmatprep.mubr.msk.f32.mxu0 %vm453_vm4, %v2257_v40  ;;  %1685 = vmatpush3.bf16.msra.mxu0 %v2247_v36 }
 0x232   :  { %1687 = vmatprep.subr.bf16.mxu0 %v2260_v41 }
 0x234   :  { %1473 = vmatmul.mubr.msk.f32.gmra.mrb[4].mxu0 %vm453_vm4, %v2272_v44 }
 0x235   :  { %1689 = vmatpush3.bf16.msra.mxu0 %v2260_v41 }
 0x236   :  { %1691 = vmatprep.subr.bf16.mxu0 %v2276_v45 }
 0x239   :  { %1693 = vmatpush3.bf16.msra.mxu0 %v2276_v45 }
 0x23a   :  { %1695 = vmatprep.subr.bf16.mxu0 %v2288_v48 }
 0x23d   :  { %1697 = vmatpush3.bf16.msra.mxu0 %v2288_v48 }
 0x23e   :  { %1699 = vmatprep.subr.bf16.mxu0 %v2298_v51 }
 0x241   :  { %1701 = vmatpush3.bf16.msra.mxu0 %v2298_v51 }
 0x242   :  { %1703 = vmatprep.subr.bf16.mxu0 %v2308_v54 }
 0x245   :  { %1705 = vmatpush3.bf16.msra.mxu0 %v2308_v54 }
 0x246   :  { %1707 = vmatprep.subr.bf16.mxu0 %v2318_v57 }
 0x249   :  { %1709 = vmatpush3.bf16.msra.mxu0 %v2318_v57 }
 0x24a   :  { %1711 = vmatprep.subr.bf16.mxu0 %v2328_v60 }
 0x24d   :  { %1713 = vmatpush3.bf16.msra.mxu0 %v2328_v60 }
 0x303   :  { %v1471_v61 = vpop.f32.mrb[2].mxu0 }
 0x304   :  { %v532_v62 = vpop.f32.mrb[3].mxu0 }
 0x305   :  { %1507 = vmatprep.mubr.f32.mxu0 %v532_v62  ;;  %v1005_v62 = vld [vmem:[%s2434_s4 + $0x8] sm:$0xff] }
 0x306   :  { %1508 = vmatmul.mubr.f32.vlgmr.msra.gmra.mrb[6].mxu0 %v1471_v61  ;;  %v1092_v61 = vld [vmem:[#allocation11 + $0x18] sm:$0xff] }
 0x307   :  { %v1474_v63 = vpop.f32.mrb[4].mxu0 }
 0x308   :  { %v542_v0 = vpop.f32.mrb[5].mxu0 }
 0x309   :  { %1510 = vmatprep.mubr.f32.mxu0 %v542_v0  ;;  %v1093_v0 = vld [vmem:[#allocation11 + $0x20] sm:$0xff] }
 0x30a   :  { %1511 = vmatmul.mubr.f32.gmra.mrb[8].mxu0 %v1474_v63 }
 0x30b   :  { %1573 = vmatprep.mubr.msk.f32.mxu0 %vm453_vm4, %v2223_v18 }
 0x3d9   :  { %v1509_v4 = vpop.f32.mrb[6].mxu0 }
 0x3da   :  { %v639_v5 = vadd.f32 %v1509_v4, %v2339_v2  ;;  %v633_v6 = vpop.f32.mrb[7].mxu0  ;;  %v1096_v4 = vld [vmem:[#allocation11 + $0x38] sm:$0xff] }
 0x3db   :  { %v634_v7 = vadd.f32 %v633_v6, %v2342_v3  ;;  %v1097_v6 = vld [vmem:[#allocation11 + $0x40] sm:$0xff] }
 0x3dc   :  { %v653_v9 = vmax.f32 %v639_v5, 0.0 }
 0x3dd   :  { %v652_v11 = vmax.f32 %v634_v7, 0.0  ;;  %v1512_v12 = vpop.f32.mrb[8].mxu0  ;;  %v1098_v7 = vld [vmem:[#allocation11 + $0x48] sm:$0xff] }
 0x3de   :  { %v649_v13 = vadd.f32 %v1512_v12, %v2347_v8  ;;  %v643_v14 = vpop.f32.mrb[9].mxu0  ;;  %v1101_v12 = vld [vmem:[#allocation11 + $0x60] sm:$0xff] }
 0x3df   :  { %v1714_v15 = vpack.c.bf16 %v653_v9, %v652_v11  ;;  %v644_v16 = vadd.f32 %v643_v14, %v2350_v10  ;;  %v1099_v9 = vld [vmem:[#allocation11 + $0x50] sm:$0xff] }
 0x3e0   :  { %v655_v17 = vmax.f32 %v649_v13, 0.0  ;;  %v1102_v13 = vld [vmem:[#allocation11 + $0x68] sm:$0xff] }
 0x3e1   :  { %v654_v18 = vmax.f32 %v644_v16, 0.0  ;;  %1715 = vmatprep.subr.bf16.mxu1 %v1714_v15  ;;  %v1826_v14 = vpack.c.bf16 %v1102_v13, %v1101_v12  ;;  %v1104_v16 = vld [vmem:[#allocation11 + $0x78] sm:$0xff] }
 0x3e2   :  { %1717 = vmatpush3.bf16.msra.mxu1 %v1714_v15  ;;  %v1103_v15 = vld [vmem:[#allocation11 + $0x70] sm:$0xff] }
 0x3e3   :  { %v1718_v19 = vpack.c.bf16 %v655_v17, %v654_v18  ;;  %v1830_v17 = vpack.c.bf16 %v1104_v16, %v1103_v15 }
 0x3e5   :  { %1719 = vmatprep.subr.bf16.mxu1 %v1718_v19 }
 0x3e6   :  { %1721 = vmatpush3.bf16.msra.mxu1 %v1718_v19 }
 0x3e7   :  { %1723 = vmatprep.subr.bf16.mxu1 %v2247_v36 }
 0x3e9   :  { %1522 = vmatmul.mubr.msk.f32.vlgmr.msra.gmra.mrb[4].mxu1 %vm453_vm4, %v2255_v39 }
 0x3ea   :  { %1524 = vmatprep.mubr.msk.f32.mxu1 %vm453_vm4, %v2257_v40  ;;  %1725 = vmatpush3.bf16.msra.mxu1 %v2247_v36 }
 0x3eb   :  { %1727 = vmatprep.subr.bf16.mxu1 %v2260_v41 }
 0x3ed   :  { %1525 = vmatmul.mubr.msk.f32.gmra.mrb[6].mxu1 %vm453_vm4, %v2272_v44 }
 0x3ee   :  { %1729 = vmatpush3.bf16.msra.mxu1 %v2260_v41 }
 0x3ef   :  { %1731 = vmatprep.subr.bf16.mxu1 %v2276_v45 }
 0x3f2   :  { %1733 = vmatpush3.bf16.msra.mxu1 %v2276_v45 }
 0x3f3   :  { %1735 = vmatprep.subr.bf16.mxu1 %v2288_v48 }
 0x3f6   :  { %1737 = vmatpush3.bf16.msra.mxu1 %v2288_v48 }
 0x3f7   :  { %1739 = vmatprep.subr.bf16.mxu1 %v2298_v51 }
 0x3fa   :  { %1741 = vmatpush3.bf16.msra.mxu1 %v2298_v51 }
 0x3fb   :  { %1743 = vmatprep.subr.bf16.mxu1 %v2308_v54 }
 0x3fe   :  { %1745 = vmatpush3.bf16.msra.mxu1 %v2308_v54 }
 0x3ff   :  { %1747 = vmatprep.subr.bf16.mxu1 %v2318_v57 }
 0x402   :  { %1749 = vmatpush3.bf16.msra.mxu1 %v2318_v57 }
 0x403   :  { %1751 = vmatprep.subr.bf16.mxu1 %v2328_v60 }
 0x406   :  { %1753 = vmatpush3.bf16.msra.mxu1 %v2328_v60 }
 0x4bc   :  { %v1523_v20 = vpop.f32.mrb[4].mxu1 }
 0x4bd   :  { %v722_v21 = vpop.f32.mrb[5].mxu1 }
 0x4be   :  { %1559 = vmatprep.mubr.f32.mxu1 %v722_v21 }
 0x4bf   :  { %1560 = vmatmul.mubr.f32.vlgmr.msra.gmra.mrb[8].mxu1 %v1523_v20 }
 0x4c0   :  { %v1526_v22 = vpop.f32.mrb[6].mxu1 }
 0x4c1   :  { %v732_v23 = vpop.f32.mrb[7].mxu1 }
 0x4c2   :  { %1562 = vmatprep.mubr.f32.mxu1 %v732_v23  ;;  %v2031_v23 = vmov 0.0  }
 0x4c3   :  { %1563 = vmatmul.mubr.f32.gmra.mrb[10].mxu1 %v1526_v22  ;;  %v2029_v22 = vmov 0.0|0.0  }
 0x4c4   :  { %1625 = vmatprep.mubr.msk.f32.mxu1 %vm453_vm4, %v1004_v42 }
 0x592   :  { %v1561_v24 = vpop.f32.mrb[8].mxu1 }
 0x593   :  { %v813_v25 = vadd.f32 %v1561_v24, %v2339_v2  ;;  %v807_v26 = vpop.f32.mrb[9].mxu1  ;;  %v1311_v24 = vld [vmem:[%s2443_s13] ss:$0 sm:$0xff] }
 0x594   :  { %v808_v27 = vadd.f32 %v807_v26, %v2342_v3 }
 0x595   :  { %v827_v28 = vmax.f32 %v813_v25, 0.0 }
 0x596   :  { %v826_v29 = vmax.f32 %v808_v27, 0.0  ;;  %v1564_v30 = vpop.f32.mrb[10].mxu1 }
 0x597   :  { %v823_v31 = vadd.f32 %v1564_v30, %v2347_v8  ;;  %v817_v32 = vpop.f32.mrb[11].mxu1 }
 0x598   :  { %v1754_v33 = vpack.c.bf16 %v827_v28, %v826_v29  ;;  %v818_v34 = vadd.f32 %v817_v32, %v2350_v10  ;;  %v1189_v32 = vld [vmem:[#allocation5] sm:$0x3] }
 0x599   :  { %v829_v35 = vmax.f32 %v823_v31, 0.0 }
 0x59a   :  { %v828_v37 = vmax.f32 %v818_v34, 0.0  ;;  %1755 = vmatprep.subr.bf16.mxu0 %v1754_v33 }
 0x59b   :  { %1757 = vmatpush3.bf16.msra.mxu0 %v1754_v33 }
 0x59c   :  { %v1758_v38 = vpack.c.bf16 %v829_v35, %v828_v37 }
 0x59e   :  { %1759 = vmatprep.subr.bf16.mxu0 %v1758_v38 }
 0x59f   :  { %1761 = vmatpush3.bf16.msra.mxu0 %v1758_v38 }
 0x5a0   :  { %1763 = vmatprep.subr.bf16.mxu0 %v2247_v36 }
 0x5a2   :  { %1574 = vmatmul.mubr.msk.f32.vlgmr.msra.gmra.mrb[10].mxu0 %vm453_vm4, %v2255_v39 }
 0x5a3   :  { %1576 = vmatprep.mubr.msk.f32.mxu0 %vm453_vm4, %v2257_v40  ;;  %1765 = vmatpush3.bf16.msra.mxu0 %v2247_v36 }
 0x5a4   :  { %1767 = vmatprep.subr.bf16.mxu0 %v2260_v41 }
 0x5a6   :  { %1577 = vmatmul.mubr.msk.f32.gmra.mrb[12].mxu0 %vm453_vm4, %v2272_v44 }
 0x5a7   :  { %1769 = vmatpush3.bf16.msra.mxu0 %v2260_v41 }
 0x5a8   :  { %1771 = vmatprep.subr.bf16.mxu0 %v2276_v45 }
 0x5ab   :  { %1773 = vmatpush3.bf16.msra.mxu0 %v2276_v45 }
 0x5ac   :  { %1775 = vmatprep.subr.bf16.mxu0 %v2288_v48 }
 0x5af   :  { %1777 = vmatpush3.bf16.msra.mxu0 %v2288_v48 }
 0x5b0   :  { %1779 = vmatprep.subr.bf16.mxu0 %v2298_v51 }
 0x5b3   :  { %1781 = vmatpush3.bf16.msra.mxu0 %v2298_v51 }
 0x5b4   :  { %1783 = vmatprep.subr.bf16.mxu0 %v2308_v54 }
 0x5b7   :  { %1785 = vmatpush3.bf16.msra.mxu0 %v2308_v54 }
 0x5b8   :  { %1787 = vmatprep.subr.bf16.mxu0 %v2318_v57 }
 0x5bb   :  { %1789 = vmatpush3.bf16.msra.mxu0 %v2318_v57 }
 0x5bc   :  { %1791 = vmatprep.subr.bf16.mxu0 %v2328_v60 }
 0x5bf   :  { %1793 = vmatpush3.bf16.msra.mxu0 %v2328_v60  ;;  %v1091_v60 = vld [vmem:[#allocation11 + $0x10] sm:$0xff] }
 0x5c0   :  { %v1806_v63 = vpack.c.bf16 %v1092_v61, %v1091_v60  ;;  %1834 = vmatprep.subr.bf16.mxu0 %v2029_v22 }
 0x675   :  { %v1575_v36 = vpop.f32.mrb[10].mxu0 }
 0x676   :  { %v896_v39 = vpop.f32.mrb[11].mxu0 }
 0x677   :  { %1611 = vmatprep.mubr.f32.mxu0 %v896_v39 }
 0x678   :  { %1612 = vmatmul.mubr.f32.vlgmr.msra.gmra.mrb[14].mxu0 %v1575_v36 }
 0x679   :  { %v1578_v40 = vpop.f32.mrb[12].mxu0 }
 0x67a   :  { %v906_v41 = vpop.f32.mrb[13].mxu0 }
 0x67b   :  { %1614 = vmatprep.mubr.f32.mxu0 %v906_v41 }
 0x67c   :  { %1615 = vmatmul.mubr.f32.gmra.mrb[16].mxu0 %v1578_v40 }
 0x67d   :  { %1667 = vmatprep.mubr.msk.f32.mxu0 %vm2030_vm5, %v2031_v23 }
 0x74b   :  { %v1613_v43 = vpop.f32.mrb[14].mxu0 }
 0x74c   :  { %v987_v44 = vadd.f32 %v1613_v43, %v2339_v2  ;;  %v981_v45 = vpop.f32.mrb[15].mxu0  ;;  %v1810_v2 = vpack.c.bf16 %v1094_v1, %v1093_v0 }
 0x74d   :  { %v982_v46 = vadd.f32 %v981_v45, %v2342_v3  ;;  %v1095_v3 = vld [vmem:[#allocation11 + $0x30] sm:$0xff] }
 0x74e   :  { %v1001_v47 = vmax.f32 %v987_v44, 0.0  ;;  %v1814_v5 = vpack.c.bf16 %v1096_v4, %v1095_v3 }
 0x74f   :  { %v1000_v48 = vmax.f32 %v982_v46, 0.0  ;;  %v1616_v49 = vpop.f32.mrb[16].mxu0 }
 0x750   :  { %v997_v50 = vadd.f32 %v1616_v49, %v2347_v8  ;;  %v991_v51 = vpop.f32.mrb[17].mxu0  ;;  %v1818_v8 = vpack.c.bf16 %v1098_v7, %v1097_v6 }
 0x751   :  { %v1794_v52 = vpack.c.bf16 %v1001_v47, %v1000_v48  ;;  %v992_v53 = vadd.f32 %v991_v51, %v2350_v10  ;;  %v1100_v10 = vld [vmem:[#allocation11 + $0x58] sm:$0xff] }
 0x752   :  { %v1003_v54 = vmax.f32 %v997_v50, 0.0  ;;  %v1822_v11 = vpack.c.bf16 %v1100_v10, %v1099_v9 }
 0x753   :  { %v1002_v57 = vmax.f32 %v992_v53, 0.0  ;;  %1795 = vmatprep.subr.bf16.mxu1 %v1794_v52 }
 0x754   :  { %1797 = vmatpush3.bf16.msra.mxu1 %v1794_v52 }
 0x755   :  { %v1798_v58 = vpack.c.bf16 %v1003_v54, %v1002_v57 }
 0x757   :  { %1799 = vmatprep.subr.bf16.mxu1 %v1798_v58 }
 0x758   :  { %1801 = vmatpush3.bf16.msra.mxu1 %v1798_v58 }
 0x759   :  { %1803 = vmatprep.subr.bf16.mxu1 %v1802_v59 }
 0x75b   :  { %1626 = vmatmul.mubr.msk.f32.vlgmr.msra.gmra.mrb[12].mxu1 %vm453_vm4, %v1005_v62 }
 0x75c   :  { %1805 = vmatpush3.bf16.msra.mxu1 %v1802_v59 }
 0x75d   :  { %1807 = vmatprep.subr.bf16.mxu1 %v1806_v63 }
 0x760   :  { %1809 = vmatpush3.bf16.msra.mxu1 %v1806_v63 }
 0x761   :  { %1811 = vmatprep.subr.bf16.mxu1 %v1810_v2 }
 0x764   :  { %1813 = vmatpush3.bf16.msra.mxu1 %v1810_v2 }
 0x765   :  { %1815 = vmatprep.subr.bf16.mxu1 %v1814_v5 }
 0x768   :  { %1817 = vmatpush3.bf16.msra.mxu1 %v1814_v5 }
 0x769   :  { %1819 = vmatprep.subr.bf16.mxu1 %v1818_v8 }
 0x76c   :  { %1821 = vmatpush3.bf16.msra.mxu1 %v1818_v8 }
 0x76d   :  { %1823 = vmatprep.subr.bf16.mxu1 %v1822_v11 }
 0x770   :  { %1825 = vmatpush3.bf16.msra.mxu1 %v1822_v11 }
 0x771   :  { %1827 = vmatprep.subr.bf16.mxu1 %v1826_v14 }
 0x774   :  { %1829 = vmatpush3.bf16.msra.mxu1 %v1826_v14 }
 0x775   :  { %1831 = vmatprep.subr.bf16.mxu1 %v1830_v17 }
 0x778   :  { %1833 = vmatpush3.bf16.msra.mxu1 %v1830_v17 }
 0x82e   :  { %v1627_v18 = vpop.f32.mrb[12].mxu1 }
 0x82f   :  { %v1078_v19 = vpop.f32.mrb[13].mxu1  ;;  %v1088_v21 = vmax.f32 %v1627_v18, 0.0 }
 0x830   :  { %v1087_v20 = vmax.f32 %v1078_v19, 0.0 }
 0x832   :  { %1660 = vmatprep.mubr.f32.mxu1 %v1087_v20 }
 0x833   :  { %1661 = vmatmul.mubr.f32.vlgmr.msra.gmra.mrb[14].mxu1 %v1088_v21 }
 0x906   :  { %v1662_v25 = vpop.f32.mrb[14].mxu1 }
 0x907   :  { %v1184_v26 = vadd.f32 %v1662_v25, %v1311_v24  ;;  %v1178_v27 = vpop.f32.mrb[15].mxu1 }
 0x908   :  { %v1179_v28 = vadd.f32 %v1311_v24, %v1178_v27 }
 0x909   :  { %v1188_v29 = vmax.f32 %v1184_v26, 0.0 }
 0x90a   :  { %v1187_v30 = vmax.f32 %v1179_v28, 0.0 }
 0x90c   :  { %v1835_v31 = vpack.c.bf16 %v1188_v29, %v1187_v30 }
 0x90e   :  { %1836 = vmatpush3.bf16.msra.mxu0 %v1835_v31 }
 0x911   :  { %1668 = vmatmul.mubr.msk.f32.vlgmr.msra.gmra.mrb[18].mxu0 %vm332_vm3, %v1189_v32 }
 0x9e4   :  { %v1259_v33 = vpop.f32.mrb[18].mxu0 }
 0x9e5   :  { %v1263_v34 = vmax.f32 %v1259_v33, 0.0  ;;  %v1669_v35 = vpop.f32.mrb[19].mxu0 }
 0x9e7   :  { %1264 = vst [vmem:[#allocation13] sm:$0x3] %v1263_v34 }
 0x9e8   :  { %2000 = shalt.err (!%p1997_p10)
}
 0x9e9   :  { %s2001_s26 = scalar_lea.hbm %s2444_s14, 32 }
 0x9ea   :  { %p2002_p11 = scmp.ne.s32.totalorder %s2444_s14, %s2001_s26  ;;  %p2005_p12 = scmp.lt.u32.totalorder %s2001_s26, %s2444_s14 }
 0x9ec   :  { %p2007_p13 = pnand %p2005_p12, %p2002_p11 }
 0x9ee   :  { %2010 = shalt.err (!%p2007_p13)
}
 0x9ef   :  { %1274 = dma.vmem_to_hbm [thread:$0]  %s1272_s0, 32, %s2444_s14, [#allocation4]  }
 0x9f0   :  { %2019 = dma.done.wait [#allocation4], 32  }
 0x9f1   :  { %2020 = vsyncadd [#allocation4], 4294967264 }
 0x9f2   :  { %1278 = vsyncpa [#allocation3], 1 }
 0x9f3   :  { %1279 = vsyncpa [#allocation6], 1 }
 0x9f4   :  { %1280 = vsyncpa [#allocation9], 1 }
 0x9f5   :  { %1281 = vsyncpa [#allocation12], 1 }
 0x9f6   :  { %1282 = vsyncpa [#allocation4], 1 }

</bundles_post_ra>
